<compile_context>
chip_gen: v6e
topology: v6e:2x2x1
jax: 0.10.0
libtpu: 0.0.40
codegen_flags: <defaults>
</compile_context>

<pallas_src>
import jax
import jax.numpy as jnp
from jax.experimental import pallas as pl
from jax.experimental.pallas import tpu as pltpu


_LANE = 128
_MAX_COLS = 8192   # widest lane-dense slab we try for


def _device_kind() -> str:
    try:
        return jax.devices()[0].device_kind.lower()
    except Exception:
        return ""


def _target_block_bytes() -> int:
    kind = _device_kind()
    if "v6" in kind or "v7" in kind:
        # v6e: 32 MiB scoped default (128 physical); v7x: 32 MiB scoped / 64
        # physical.  2-deep in + out buffers x 4 MiB = 16 MiB resident: safe.
        return 4 * 1024 * 1024
    # v5e (and older / unknown): 16 MiB scoped default; 4 x 2 MiB = 8 MiB
    # resident stays well inside it while already sitting near HBM roofline.
    return 2 * 1024 * 1024


# ---------------------------------------------------------------------------
# 1) True forward of the abstract base class: identity, no kernel launch.
# ---------------------------------------------------------------------------
def model_forward(x: jax.Array) -> jax.Array:
    """`Model.forward` is @abstractmethod (body = pass): identity pass-through.

    Returning `x` directly costs zero HBM traffic and zero launch overhead;
    the Pallas kernels below are the templates a concrete subclass's compute
    would drop into.
    """
    return x


# ---------------------------------------------------------------------------
# 2) Launched identity for ragged sizes: one HBM->HBM DMA.
#    No VMEM round trip, no per-grid-step overhead, no pad/slice round trips.
# ---------------------------------------------------------------------------
def _dma_copy_kernel(x_hbm, o_hbm, sem):
    cp = pltpu.make_async_copy(x_hbm, o_hbm, sem)
    cp.start()
    cp.wait()


def _identity_dma(x: jax.Array) -> jax.Array:
    nbytes = x.size * jnp.dtype(x.dtype).itemsize
    return pl.pallas_call(
        _dma_copy_kernel,
        out_shape=jax.ShapeDtypeStruct(x.shape, x.dtype),
        in_specs=[pl.BlockSpec(memory_space=pl.ANY)],
        out_specs=pl.BlockSpec(memory_space=pl.ANY),
        scratch_shapes=[pltpu.SemaphoreType.DMA],
        cost_estimate=pl.CostEstimate(
            flops=0, transcendentals=0, bytes_accessed=2 * nbytes),
    )(x)


# ---------------------------------------------------------------------------
# 3) Tiled, pipelined, lane-dense template: where subclass compute would go.
# ---------------------------------------------------------------------------
def _passthrough_kernel(x_ref, o_ref):
    # Abstract `Model.forward` defines no compute: pass the tile through.
    # Concrete subclass compute (conv / linear / ...) would replace this body.
    o_ref[...] = x_ref[...]


def _choose_cols(n: int):
    """Largest multiple-of-128 divisor of n (<= _MAX_COLS), or None."""
    best = None
    c = _LANE
    top = min(n, _MAX_COLS)
    while c <= top:
        if n % c == 0:
            best = c
        c += _LANE
    return best


def _forward_template_2d(x2d: jax.Array) -> jax.Array:
    rows, cols = x2d.shape
    itemsize = jnp.dtype(x2d.dtype).itemsize
    block_bytes = _target_block_bytes()

    # Sublane block dim: multiple of 32 (covers f32/bf16/int8/fp8 min tiles),
    # sized so one block is ~block_bytes; or the full row extent when smaller.
    target_rows = max(32, (block_bytes // (cols * itemsize)) // 32 * 32)
    block_rows = rows if rows <= target_rows else target_rows
    grid = (pl.cdiv(rows, block_rows),)
    nbytes = rows * cols * itemsize

    # No input_output_aliases: without donation XLA would add a defensive copy
    # (a third HBM pass), and aliasing in HBM becomes a RAW hazard once real
    # subclass compute changes the output index_map.
    return pl.pallas_call(
        _passthrough_kernel,
        out_shape=jax.ShapeDtypeStruct((rows, cols), x2d.dtype),
        grid_spec=pltpu.PrefetchScalarGridSpec(
            num_scalar_prefetch=0,
            grid=grid,
            in_specs=[pl.BlockSpec((block_rows, cols), lambda i: (i, 0))],
            out_specs=pl.BlockSpec((block_rows, cols), lambda i: (i, 0)),
        ),
        cost_estimate=pl.CostEstimate(
            flops=0, transcendentals=0, bytes_accessed=2 * nbytes),
        compiler_params=pltpu.CompilerParams(
            # TODO(synk): on v7x consider pltpu.CORE_PARALLEL on this axis to
            # shard the slab across both TensorCores once real compute lands.
            dimension_semantics=("parallel",),
        ),
    )(x2d)


@jax.jit
def pallas_forward(x: jax.Array) -> jax.Array:
    """Launched Pallas forward: pass-through copy (template for subclass compute)."""
    n = x.size
    cols = _choose_cols(n)
    if cols is not None:
        # Lane-dense factorization of the exact element count: no pad, no slice.
        return _forward_template_2d(x.reshape(n // cols, cols)).reshape(x.shape)
    # Ragged element count (128 does not divide n): single HBM->HBM DMA,
    # exactly 2x nbytes of traffic (replaces the old pad/kernel/slice path).
    return _identity_dma(x)


if __name__ == "__main__":
    key = jax.random.PRNGKey(0)
    # Small NCHW input consistent with what a Model subclass would receive.
    x = jax.random.normal(key, (2, 4, 16, 16), dtype=jnp.float32)

    # 1) True abstract forward: identity, no launch.
    y0 = model_forward(x)
    jax.block_until_ready(y0)
    assert y0.shape == x.shape and y0.dtype == x.dtype
    assert bool(jnp.all(y0 == x))

    # 2) Launched pass-through: lane-dense tiled template path (2048 % 128 == 0).
    y1 = pallas_forward(x)
    jax.block_until_ready(y1)
    assert y1.shape == x.shape and y1.dtype == x.dtype
    assert bool(jnp.all(y1 == x))

    # 3) Ragged element count -> single HBM->HBM DMA path.
    x_ragged = jax.random.normal(jax.random.PRNGKey(1), (3, 5, 7), dtype=jnp.float32)
    y2 = pallas_forward(x_ragged)
    jax.block_until_ready(y2)
    assert y2.shape == x_ragged.shape and y2.dtype == x_ragged.dtype
    assert bool(jnp.all(y2 == x_ragged))

    print("KERNEL_OK")
</pallas_src>

<mosaic_0001>
module attributes {stable_mosaic.version = 11 : i64} {
  func.func @_passthrough_kernel(%arg0: i32, %arg1: memref<1x2048xf32, #tpu.memory_space<vmem>>, %arg2: memref<1x2048xf32, #tpu.memory_space<vmem>>) attributes {dimension_semantics = [#tpu.dimension_semantics<parallel>], iteration_bounds = array<i64: 1>, scalar_prefetch = 0 : i64, scratch_operands = 0 : i64, tpu.core_type = #tpu.core_type<tc>, window_params = [{transform_indices = @transform_0, window_bounds = array<i64: 1, 2048>}, {transform_indices = @transform_1, window_bounds = array<i64: 1, 2048>}]} {
    %c0 = arith.constant 0 : index
    %c0_0 = arith.constant 0 : index
    %0 = vector.load %arg1[%c0, %c0_0] : memref<1x2048xf32, #tpu.memory_space<vmem>>, vector<1x2048xf32>
    %c0_1 = arith.constant 0 : index
    %c0_2 = arith.constant 0 : index
    %1 = vector.load %arg2[%c0_1, %c0_2] : memref<1x2048xf32, #tpu.memory_space<vmem>>, vector<1x2048xf32>
    tpu.vector_store %arg2[%c0_1, %c0_2], %0 {strides = array<i32>} : memref<1x2048xf32, #tpu.memory_space<vmem>>, vector<1x2048xf32>,
    return
  }
  func.func @transform_0(%arg0: i32) -> (i32, i32) {
    %c0_i32 = arith.constant 0 : i32
    %c0_i32_0 = arith.constant 0 : i32
    return %arg0, %c0_i32 : i32, i32
  }
  func.func @transform_1(%arg0: i32) -> (i32, i32) {
    %c0_i32 = arith.constant 0 : i32
    %c0_i32_0 = arith.constant 0 : i32
    return %arg0, %c0_i32 : i32, i32
  }
}

</mosaic_0001>

<bundles_post_ra>
// kernel: pallas_forward.1
= control target key start
LH: loop header
LB: loop body
LE: loop exit
PB: predicated region body
PF: predicated region fallthrough
CT: control target
= control target key end

     0   :  { %s38_s0 = inlined_call_operand.vmem [shape: f32[1,2048], index: 0, kind: input, shape index: {}]   ;;  %s39_s1 = inlined_call_operand.vmem [shape: f32[1,2048], index: 1, kind: output, shape index: {}]  }
   0x1   :  { %v8_v0 = vld [vmem:[%s38_s0] sm:$0xff]  ;;  %v9_v1 = vld [vmem:[%s38_s0 + $0x8] sm:$0xff] }
   0x2   :  { %10 = vst [vmem:[%s39_s1] sm:$0xff] %v8_v0  ;;  %11 = vst [vmem:[%s39_s1 + $0x8] sm:$0xff] %v9_v1 }

</bundles_post_ra>
